<compile_context>
chip_gen: v7x
topology: tpu7x:2x2x1
jax: 0.10.0
libtpu: 0.0.40
codegen_flags: <defaults>
</compile_context>

<pallas_src>
import functools

import jax
import jax.numpy as jnp
from jax.experimental import pallas as pl
from jax.experimental.pallas import tpu as pltpu


def _resblock_kernel(x_ref, w1_ref, b1_ref, w2_ref, b2_ref, mask_ref, out_ref, *, H, W):
    """Fused relu -> conv1 -> relu -> conv2 -> (+x) for one image (channels-first)."""
    HW = H * W
    PAD = W + 1

    x = x_ref[0].astype(jnp.float32)            # (C, H*W)  lane-dense load
    m = mask_ref[...].astype(jnp.float32)       # (2, H*W)
    mask_l = m[0:1, :]                          # keep-mask for dx == 0 taps
    mask_r = m[1:2, :]                          # keep-mask for dx == 2 taps

    def conv3x3(a, w_mat, b):
        # a: (Cin, H*W), already relu'd. Zero-extend the flattened spatial axis so
        # vertically out-of-range taps read zeros; horizontally out-of-range taps
        # (row wrap-around in the flat layout) are killed by the edge masks.
        cin = a.shape[0]
        zpad = jnp.zeros((cin, PAD), jnp.float32)
        az = jnp.concatenate([zpad, a, zpad], axis=1)     # (Cin, H*W + 2W + 2)
        taps = []
        for dy in range(3):
            for dx in range(3):
                start = PAD + (dy - 1) * W + (dx - 1)
                t = az[:, start:start + HW]               # (Cin, H*W) lane slice
                if dx == 0:
                    t = t * mask_l
                elif dx == 2:
                    t = t * mask_r
                taps.append(t)
        col = jnp.concatenate(taps, axis=0)               # (9*Cin, H*W) im2col
        acc = jnp.dot(w_mat, col, preferred_element_type=jnp.float32)
        return acc + b                                    # bias folded in once

    r = conv3x3(jnp.maximum(x, 0.0),
                w1_ref[...].astype(jnp.float32), b1_ref[...].astype(jnp.float32))
    r = conv3x3(jnp.maximum(r, 0.0),
                w2_ref[...].astype(jnp.float32), b2_ref[...].astype(jnp.float32))

    out_ref[0] = (x + r).astype(out_ref.dtype)            # lane-dense store


def resblock_forward(x, params):
    """ResBlock forward (identity shortcut). x: (N, C, H, W) NCHW, like PyTorch."""
    w1, b1, w2, b2 = params
    N, C, H, W = x.shape
    Cout = w1.shape[-1]
    assert w1.shape == (3, 3, C, Cout) and Cout == C, "identity-shortcut config only"
    HW = H * W

    # Free / tiny one-time repacking done by XLA outside the kernel.
    x_flat = x.reshape(N, C, HW)
    w1m = jnp.transpose(w1, (3, 0, 1, 2)).reshape(Cout, 9 * C)      # (Cout, 9*Cin)
    w2m = jnp.transpose(w2, (3, 0, 1, 2)).reshape(Cout, 9 * Cout)
    b1c = b1.reshape(Cout, 1).astype(jnp.float32)
    b2c = b2.reshape(Cout, 1).astype(jnp.float32)

    # Keep-masks for the horizontal conv edges (row 0: dx==0 taps, row 1: dx==2 taps).
    colidx = jnp.arange(HW, dtype=jnp.int32) % W
    edge_mask = jnp.stack([(colidx != 0), (colidx != W - 1)]).astype(jnp.float32)

    kernel = functools.partial(_resblock_kernel, H=H, W=W)
    out_flat = pl.pallas_call(
        kernel,
        out_shape=jax.ShapeDtypeStruct((N, Cout, HW), x.dtype),
        grid=(N,),
        in_specs=[
            pl.BlockSpec((1, C, HW), lambda n: (n, 0, 0)),
            pl.BlockSpec((Cout, 9 * C), lambda n: (0, 0)),
            pl.BlockSpec((Cout, 1), lambda n: (0, 0)),
            pl.BlockSpec((Cout, 9 * Cout), lambda n: (0, 0)),
            pl.BlockSpec((Cout, 1), lambda n: (0, 0)),
            pl.BlockSpec((2, HW), lambda n: (0, 0)),
        ],
        out_specs=pl.BlockSpec((1, Cout, HW), lambda n: (n, 0, 0)),
        compiler_params=pltpu.CompilerParams(dimension_semantics=("parallel",)),
    )(x_flat, w1m, b1c, w2m, b2c, edge_mask)
    return out_flat.reshape(N, Cout, H, W)


def init_resblock_params(key, indim, outdim):
    """Deterministic synthetic init (PyTorch-Conv2d-like uniform fan-in scale)."""
    k1, k2, k3, k4 = jax.random.split(key, 4)
    bound1 = 1.0 / jnp.sqrt(indim * 9.0)
    bound2 = 1.0 / jnp.sqrt(outdim * 9.0)
    w1 = jax.random.uniform(k1, (3, 3, indim, outdim), jnp.float32, -bound1, bound1)
    b1 = jax.random.uniform(k2, (outdim,), jnp.float32, -bound1, bound1)
    w2 = jax.random.uniform(k3, (3, 3, outdim, outdim), jnp.float32, -bound2, bound2)
    b2 = jax.random.uniform(k4, (outdim,), jnp.float32, -bound2, bound2)
    return (w1, b1, w2, b2)


def _conv3x3_ref(x, w, b):
    y = jax.lax.conv_general_dilated(
        x, w, window_strides=(1, 1), padding=((1, 1), (1, 1)),
        dimension_numbers=("NCHW", "HWIO", "NCHW"))
    return y + b[None, :, None, None]


def _resblock_ref(x, params):
    w1, b1, w2, b2 = params
    r = _conv3x3_ref(jnp.maximum(x, 0.0), w1, b1)
    r = _conv3x3_ref(jnp.maximum(r, 0.0), w2, b2)
    return x + r


if __name__ == "__main__":
    key = jax.random.PRNGKey(0)
    kx, kp = jax.random.split(key)

    N, C, H, W = 2, 4, 16, 16                       # NCHW, same as the PyTorch module
    x = jax.random.normal(kx, (N, C, H, W), jnp.float32)
    params = init_resblock_params(kp, indim=C, outdim=C)

    out = jax.jit(resblock_forward)(x, params)
    out = jax.block_until_ready(out)

    ref = _resblock_ref(x, params)
    assert out.shape == (N, C, H, W)
    max_err = float(jnp.max(jnp.abs(out - ref)))
    assert jnp.allclose(out, ref, atol=5e-4, rtol=5e-4), f"mismatch vs reference: {max_err}"

    print("KERNEL_OK")
</pallas_src>

<mosaic_0001>
module attributes {stable_mosaic.version = 11 : i64} {
  func.func @_resblock_kernel(%arg0: i32, %arg1: memref<1x4x256xf32, #tpu.memory_space<vmem>>, %arg2: memref<4x36xf32, #tpu.memory_space<vmem>>, %arg3: memref<4x1xf32, #tpu.memory_space<vmem>>, %arg4: memref<4x36xf32, #tpu.memory_space<vmem>>, %arg5: memref<4x1xf32, #tpu.memory_space<vmem>>, %arg6: memref<2x256xf32, #tpu.memory_space<vmem>>, %arg7: memref<1x4x256xf32, #tpu.memory_space<vmem>>) attributes {dimension_semantics = [#tpu.dimension_semantics<parallel>], iteration_bounds = array<i64: 2>, scalar_prefetch = 0 : i64, scratch_operands = 0 : i64, tpu.core_type = #tpu.core_type<tc>, window_params = [{transform_indices = @transform_0, window_bounds = array<i64: 1, 4, 256>}, {pipeline_mode = #tpu.pipeline_mode<synchronous>, transform_indices = @transform_1, window_bounds = array<i64: 4, 36>}, {pipeline_mode = #tpu.pipeline_mode<synchronous>, transform_indices = @transform_2, window_bounds = array<i64: 4, 1>}, {pipeline_mode = #tpu.pipeline_mode<synchronous>, transform_indices = @transform_3, window_bounds = array<i64: 4, 36>}, {pipeline_mode = #tpu.pipeline_mode<synchronous>, transform_indices = @transform_4, window_bounds = array<i64: 4, 1>}, {pipeline_mode = #tpu.pipeline_mode<synchronous>, transform_indices = @transform_5, window_bounds = array<i64: 2, 256>}, {transform_indices = @transform_6, window_bounds = array<i64: 1, 4, 256>}]} {
    %c0 = arith.constant 0 : index
    %c0_0 = arith.constant 0 : index
    %c0_1 = arith.constant 0 : index
    %0 = vector.load %arg1[%c0, %c0_0, %c0_1] : memref<1x4x256xf32, #tpu.memory_space<vmem>>, vector<1x4x256xf32>
    %1 = vector.shape_cast %0 : vector<1x4x256xf32> to vector<4x256xf32>
    %c0_2 = arith.constant 0 : index
    %c0_3 = arith.constant 0 : index
    %2 = vector.load %arg6[%c0_2, %c0_3] : memref<2x256xf32, #tpu.memory_space<vmem>>, vector<2x256xf32>
    %3 = vector.extract_strided_slice %2 {offsets = [0, 0], sizes = [1, 256], strides = [1, 1]} : vector<2x256xf32> to vector<1x256xf32>
    %4 = vector.extract_strided_slice %2 {offsets = [1, 0], sizes = [1, 256], strides = [1, 1]} : vector<2x256xf32> to vector<1x256xf32>
    %cst = arith.constant 0.000000e+00 : f32
    %5 = vector.broadcast %cst : f32 to vector<4x256xf32>
    %6 = arith.maximumf %1, %5 : vector<4x256xf32>
    %c0_4 = arith.constant 0 : index
    %c0_5 = arith.constant 0 : index
    %7 = vector.load %arg2[%c0_4, %c0_5] : memref<4x36xf32, #tpu.memory_space<vmem>>, vector<4x36xf32>
    %c0_6 = arith.constant 0 : index
    %c0_7 = arith.constant 0 : index
    %8 = vector.load %arg3[%c0_6, %c0_7] : memref<4x1xf32, #tpu.memory_space<vmem>>, vector<4x1xf32>
    %cst_8 = arith.constant 0.000000e+00 : f32
    %9 = vector.broadcast %cst_8 : f32 to vector<4x17xf32>
    %10 = tpu.concatenate %9, %6, %9 in 1 : vector<4x17xf32>, vector<4x256xf32>, vector<4x17xf32> -> vector<4x290xf32>
    %11 = vector.extract_strided_slice %10 {offsets = [0, 0], sizes = [4, 256], strides = [1, 1]} : vector<4x290xf32> to vector<4x256xf32>
    %12 = vector.broadcast %3 : vector<1x256xf32> to vector<4x256xf32>
    %13 = arith.mulf %11, %12 : vector<4x256xf32>
    %14 = vector.extract_strided_slice %10 {offsets = [0, 1], sizes = [4, 256], strides = [1, 1]} : vector<4x290xf32> to vector<4x256xf32>
    %15 = vector.extract_strided_slice %10 {offsets = [0, 2], sizes = [4, 256], strides = [1, 1]} : vector<4x290xf32> to vector<4x256xf32>
    %16 = vector.broadcast %4 : vector<1x256xf32> to vector<4x256xf32>
    %17 = arith.mulf %15, %16 : vector<4x256xf32>
    %18 = vector.extract_strided_slice %10 {offsets = [0, 16], sizes = [4, 256], strides = [1, 1]} : vector<4x290xf32> to vector<4x256xf32>
    %19 = vector.broadcast %3 : vector<1x256xf32> to vector<4x256xf32>
    %20 = arith.mulf %18, %19 : vector<4x256xf32>
    %21 = vector.extract_strided_slice %10 {offsets = [0, 17], sizes = [4, 256], strides = [1, 1]} : vector<4x290xf32> to vector<4x256xf32>
    %22 = vector.extract_strided_slice %10 {offsets = [0, 18], sizes = [4, 256], strides = [1, 1]} : vector<4x290xf32> to vector<4x256xf32>
    %23 = vector.broadcast %4 : vector<1x256xf32> to vector<4x256xf32>
    %24 = arith.mulf %22, %23 : vector<4x256xf32>
    %25 = vector.extract_strided_slice %10 {offsets = [0, 32], sizes = [4, 256], strides = [1, 1]} : vector<4x290xf32> to vector<4x256xf32>
    %26 = vector.broadcast %3 : vector<1x256xf32> to vector<4x256xf32>
    %27 = arith.mulf %25, %26 : vector<4x256xf32>
    %28 = vector.extract_strided_slice %10 {offsets = [0, 33], sizes = [4, 256], strides = [1, 1]} : vector<4x290xf32> to vector<4x256xf32>
    %29 = vector.extract_strided_slice %10 {offsets = [0, 34], sizes = [4, 256], strides = [1, 1]} : vector<4x290xf32> to vector<4x256xf32>
    %30 = vector.broadcast %4 : vector<1x256xf32> to vector<4x256xf32>
    %31 = arith.mulf %29, %30 : vector<4x256xf32>
    %32 = tpu.concatenate %13, %14, %17, %20, %21, %24, %27, %28, %31 in 0 : vector<4x256xf32>, vector<4x256xf32>, vector<4x256xf32>, vector<4x256xf32>, vector<4x256xf32>, vector<4x256xf32>, vector<4x256xf32>, vector<4x256xf32>, vector<4x256xf32> -> vector<36x256xf32>
    %cst_9 = arith.constant dense<0.000000e+00> : vector<4x256xf32>
    %33 = tpu.matmul %7, %32, %cst_9 {dimension_numbers = #tpu.dot_dimension_numbers<[1], [0], [0], [1], [0, 0, 1, 1], [], []>} : vector<4x36xf32>, vector<36x256xf32>, vector<4x256xf32> -> vector<4x256xf32>
    %34 = vector.broadcast %8 : vector<4x1xf32> to vector<4x256xf32>
    %35 = arith.addf %33, %34 : vector<4x256xf32>
    %cst_10 = arith.constant 0.000000e+00 : f32
    %36 = vector.broadcast %cst_10 : f32 to vector<4x256xf32>
    %37 = arith.maximumf %35, %36 : vector<4x256xf32>
    %c0_11 = arith.constant 0 : index
    %c0_12 = arith.constant 0 : index
    %38 = vector.load %arg4[%c0_11, %c0_12] : memref<4x36xf32, #tpu.memory_space<vmem>>, vector<4x36xf32>
    %c0_13 = arith.constant 0 : index
    %c0_14 = arith.constant 0 : index
    %39 = vector.load %arg5[%c0_13, %c0_14] : memref<4x1xf32, #tpu.memory_space<vmem>>, vector<4x1xf32>
    %cst_15 = arith.constant 0.000000e+00 : f32
    %40 = vector.broadcast %cst_15 : f32 to vector<4x17xf32>
    %41 = tpu.concatenate %40, %37, %40 in 1 : vector<4x17xf32>, vector<4x256xf32>, vector<4x17xf32> -> vector<4x290xf32>
    %42 = vector.extract_strided_slice %41 {offsets = [0, 0], sizes = [4, 256], strides = [1, 1]} : vector<4x290xf32> to vector<4x256xf32>
    %43 = vector.broadcast %3 : vector<1x256xf32> to vector<4x256xf32>
    %44 = arith.mulf %42, %43 : vector<4x256xf32>
    %45 = vector.extract_strided_slice %41 {offsets = [0, 1], sizes = [4, 256], strides = [1, 1]} : vector<4x290xf32> to vector<4x256xf32>
    %46 = vector.extract_strided_slice %41 {offsets = [0, 2], sizes = [4, 256], strides = [1, 1]} : vector<4x290xf32> to vector<4x256xf32>
    %47 = vector.broadcast %4 : vector<1x256xf32> to vector<4x256xf32>
    %48 = arith.mulf %46, %47 : vector<4x256xf32>
    %49 = vector.extract_strided_slice %41 {offsets = [0, 16], sizes = [4, 256], strides = [1, 1]} : vector<4x290xf32> to vector<4x256xf32>
    %50 = vector.broadcast %3 : vector<1x256xf32> to vector<4x256xf32>
    %51 = arith.mulf %49, %50 : vector<4x256xf32>
    %52 = vector.extract_strided_slice %41 {offsets = [0, 17], sizes = [4, 256], strides = [1, 1]} : vector<4x290xf32> to vector<4x256xf32>
    %53 = vector.extract_strided_slice %41 {offsets = [0, 18], sizes = [4, 256], strides = [1, 1]} : vector<4x290xf32> to vector<4x256xf32>
    %54 = vector.broadcast %4 : vector<1x256xf32> to vector<4x256xf32>
    %55 = arith.mulf %53, %54 : vector<4x256xf32>
    %56 = vector.extract_strided_slice %41 {offsets = [0, 32], sizes = [4, 256], strides = [1, 1]} : vector<4x290xf32> to vector<4x256xf32>
    %57 = vector.broadcast %3 : vector<1x256xf32> to vector<4x256xf32>
    %58 = arith.mulf %56, %57 : vector<4x256xf32>
    %59 = vector.extract_strided_slice %41 {offsets = [0, 33], sizes = [4, 256], strides = [1, 1]} : vector<4x290xf32> to vector<4x256xf32>
    %60 = vector.extract_strided_slice %41 {offsets = [0, 34], sizes = [4, 256], strides = [1, 1]} : vector<4x290xf32> to vector<4x256xf32>
    %61 = vector.broadcast %4 : vector<1x256xf32> to vector<4x256xf32>
    %62 = arith.mulf %60, %61 : vector<4x256xf32>
    %63 = tpu.concatenate %44, %45, %48, %51, %52, %55, %58, %59, %62 in 0 : vector<4x256xf32>, vector<4x256xf32>, vector<4x256xf32>, vector<4x256xf32>, vector<4x256xf32>, vector<4x256xf32>, vector<4x256xf32>, vector<4x256xf32>, vector<4x256xf32> -> vector<36x256xf32>
    %cst_16 = arith.constant dense<0.000000e+00> : vector<4x256xf32>
    %64 = tpu.matmul %38, %63, %cst_16 {dimension_numbers = #tpu.dot_dimension_numbers<[1], [0], [0], [1], [0, 0, 1, 1], [], []>} : vector<4x36xf32>, vector<36x256xf32>, vector<4x256xf32> -> vector<4x256xf32>
    %65 = vector.broadcast %39 : vector<4x1xf32> to vector<4x256xf32>
    %66 = arith.addf %64, %65 : vector<4x256xf32>
    %67 = arith.addf %1, %66 : vector<4x256xf32>
    %c0_17 = arith.constant 0 : index
    %c0_18 = arith.constant 0 : index
    %c0_19 = arith.constant 0 : index
    %68 = vector.load %arg7[%c0_17, %c0_18, %c0_19] : memref<1x4x256xf32, #tpu.memory_space<vmem>>, vector<1x4x256xf32>
    %69 = vector.shape_cast %68 : vector<1x4x256xf32> to vector<4x256xf32>
    %70 = vector.shape_cast %67 : vector<4x256xf32> to vector<1x4x256xf32>
    tpu.vector_store %arg7[%c0_17, %c0_18, %c0_19], %70 {strides = array<i32>} : memref<1x4x256xf32, #tpu.memory_space<vmem>>, vector<1x4x256xf32>,
    return
  }
  func.func @transform_0(%arg0: i32) -> (i32, i32, i32) {
    %c0_i32 = arith.constant 0 : i32
    %c0_i32_0 = arith.constant 0 : i32
    %c0_i32_1 = arith.constant 0 : i32
    return %arg0, %c0_i32, %c0_i32_0 : i32, i32, i32
  }
  func.func @transform_1(%arg0: i32) -> (i32, i32) {
    %c0_i32 = arith.constant 0 : i32
    %c0_i32_0 = arith.constant 0 : i32
    %c0_i32_1 = arith.constant 0 : i32
    return %c0_i32, %c0_i32_0 : i32, i32
  }
  func.func @transform_2(%arg0: i32) -> (i32, i32) {
    %c0_i32 = arith.constant 0 : i32
    %c0_i32_0 = arith.constant 0 : i32
    %c0_i32_1 = arith.constant 0 : i32
    return %c0_i32, %c0_i32_0 : i32, i32
  }
  func.func @transform_3(%arg0: i32) -> (i32, i32) {
    %c0_i32 = arith.constant 0 : i32
    %c0_i32_0 = arith.constant 0 : i32
    %c0_i32_1 = arith.constant 0 : i32
    return %c0_i32, %c0_i32_0 : i32, i32
  }
  func.func @transform_4(%arg0: i32) -> (i32, i32) {
    %c0_i32 = arith.constant 0 : i32
    %c0_i32_0 = arith.constant 0 : i32
    %c0_i32_1 = arith.constant 0 : i32
    return %c0_i32, %c0_i32_0 : i32, i32
  }
  func.func @transform_5(%arg0: i32) -> (i32, i32) {
    %c0_i32 = arith.constant 0 : i32
    %c0_i32_0 = arith.constant 0 : i32
    %c0_i32_1 = arith.constant 0 : i32
    return %c0_i32, %c0_i32_0 : i32, i32
  }
  func.func @transform_6(%arg0: i32) -> (i32, i32, i32) {
    %c0_i32 = arith.constant 0 : i32
    %c0_i32_0 = arith.constant 0 : i32
    %c0_i32_1 = arith.constant 0 : i32
    return %arg0, %c0_i32, %c0_i32_0 : i32, i32, i32
  }
}

</mosaic_0001>

<bundles_post_ra>
// kernel: resblock_forward.1
= control target key start
LH: loop header
LB: loop body
LE: loop exit
PB: predicated region body
PF: predicated region fallthrough
CT: control target
= control target key end

     0   :  { %s1057_s21 = smov 0   ;;  %s1333_s0 = inlined_call_operand.vmem [shape: f32[2,4,256], index: 0, kind: input, shape index: {}]   ;;  %s1334_s1 = inlined_call_operand.vmem [shape: f32[4,36], index: 1, kind: input, shape index: {}]   ;;  %s1335_s2 = inlined_call_operand.vmem [shape: f32[4,1], index: 2, kind: input, shape index: {}]   ;;  %s1336_s3 = inlined_call_operand.vmem [shape: f32[4,36], index: 3, kind: input, shape index: {}]   ;;  %s1337_s4 = inlined_call_operand.vmem [shape: f32[4,1], index: 4, kind: input, shape index: {}]   ;;  %s1338_s5 = inlined_call_operand.vmem [shape: f32[2,256], index: 5, kind: input, shape index: {}]   ;;  %s1339_s6 = inlined_call_operand.vmem [shape: f32[2,4,256], index: 6, kind: output, shape index: {}]  }
   0x1 LB: > { %s867_s22 = sadd.s32 4294967295, %s1004_s21   ;;  %p871_p0 = scmp.ge.s32.totalorder %s1004_s21, 1  ;;  %s1004_s21 = sphi %s1057_s21, %s16_s21  }
   0x2   : > { %p212_p1 = scmp.lt.s32.totalorder %s1004_s21, 3 }
   0x4   : > { %p213_p2 = pnand %p871_p0, %p212_p1 }
   0x5   : > { %p242_p3 = scmp.lt.s32.totalorder (!%p213_p2), %s867_s22, 1  ;;  %v271_v0 = vlaneseq (!%p213_p2)  ;;  %v253_v2 = vld [vmem:[%s1338_s5] sm:$0xf] (!%p213_p2)  ;;  %s1006_s29 = smov (!%p213_p2), 17   ;;  %vm263_vm0 = vcmask (!%p213_p2), 138240   ;;  %vm315_vm1 = vcmask (!%p213_p2), 15360  }
   0x6   : > { %216 = sbr.rel (%p213_p2) target bundleno = 994 (0x3e2), region = 44  ;;  %s1007_s30 = smov (!%p213_p2), 16   ;;  %vm329_vm2 = vcmask (!%p213_p2), 130048   ;;  %vm341_vm3 = vcmask (!%p213_p2), 146432   ;;  %vm353_vm4 = vcmask (!%p213_p2), 261120   ;;  %vm365_vm5 = vcmask (!%p213_p2), 277504  }
   0x7   : > { %v272_v1 = vshrl.u32 (!%p213_p2), %v271_v0, 7  ;;  %s1008_s7 = smov (!%p213_p2), 2   ;;  %s1009_s8 = smov (!%p213_p2), 18   ;;  %vm426_vm6 = vcmask (!%p213_p2), 908288   ;;  %vm384_vm7 = vcmask (!%p213_p2), 1039360   ;;  %vm398_vm8 = vcmask (!%p213_p2), 1031168  }
   0x8   : > { %s1010_s9 = smov (!%p213_p2), 32   ;;  %s1011_s10 = smov (!%p213_p2), 34   ;;  %vm485_vm9 = vcmask (!%p213_p2), 1043456   ;;  %vm443_vm10 = vcmask (!%p213_p2), 900096   ;;  %vm457_vm11 = vcmask (!%p213_p2), 785408   ;;  %vm415_vm12 = vcmask (!%p213_p2), 916480  }
   0x9   : > { %v273_v3 = vsub.s32 (!%p213_p2), 0, %v272_v1  ;;  %v293_v4 = vsub.s32 (!%p213_p2), 1, %v272_v1  ;;  %v277_v5 = vsub.s32 (!%p213_p2), 2, %v272_v1  ;;  %v297_v10 = vsub.s32 (!%p213_p2), 3, %v272_v1  ;;  %s1012_s11 = smov (!%p213_p2), 111   ;;  %s1013_s12 = smov (!%p213_p2), 127  }
   0xa   : > { %s1014_s13 = smov (!%p213_p2), 126   ;;  %s1015_s14 = smov (!%p213_p2), 112   ;;  %v1019_v1 = vmov (!%p213_p2), 0.0   ;;  %vm468_vm13 = vcmask (!%p213_p2), 777216   ;;  %vm482_vm14 = vcmask (!%p213_p2), 769024   ;;  %vm499_vm15 = vcmask (!%p213_p2), 293888  }
   0xb   : > { %v274_v7 = vrot.slane (!%p213_p2), %v253_v2, %v273_v3  ;;  %v294_v8 = vrot.slane (!%p213_p2), %v253_v2, %v293_v4  ;;  %v278_v9 = vrot.slane (!%p213_p2), %v253_v2, %v277_v5  ;;  %v298_v15 = vrot.slane (!%p213_p2), %v253_v2, %v297_v10  ;;  %s1016_s15 = smov (!%p213_p2), 95   ;;  %s1017_s16 = smov (!%p213_p2), 96   ;;  %571 = vmatprep.mubr.f32.mxu0 (!%p213_p2), %v1019_v1 }
   0xc   : > { %s1018_s17 = smov (!%p213_p2), 110   ;;  %v1020_v2 = vmov (!%p213_p2), 0   ;;  %799 = vmatprep.mubr.f32.mxu1 (!%p213_p2), %v1019_v1  ;;  %s1021_s18 = smov (!%p213_p2), 94  }
   0xd   : > { %s1341_s22 = smov (!%p242_p3, %s867_s22), 1  ;;  %v1079_v12 = vrot.slane %v274_v7, %v273_v3  ;;  %v304_v13 = vrot.slane %v294_v8, %v293_v4  ;;  %v1083_v14 = vrot.slane %v278_v9, %v273_v3  ;;  %v308_v17 = vrot.slane %v298_v15, %v293_v4  ;;  %961 = vset.pattern.permute.xlu1 %v1020_v2  ;;  %v256_v7 = vld [vmem:[%s1335_s2] sm:$0xf] }
   0xe   : > { %s884_s25 = sshll.u32 %s1341_s22, 3  ;;  %997 = vset.pattern.permute.xlu0 %v1020_v2 }
   0xf   : > { %s246_s28 = scalar_lea.vmem %s1333_s0, %s884_s25  ;;  %325 = vrot.lane.b32.xlu1 %v1079_v12, %s1007_s30 }
  0x10   : > { %v1076_v6 = vld [vmem:[%s246_s28] sm:$0xff] }
  0x11   : > { %v254_v11 = vmax.f32 %v1076_v6, 0.0 }
  0x13   : > { %259 = vrot.lane.b32.xlu0 %v254_v11, %s1006_s29  ;;  %v258_v16 = vcombine.high %v254_v11, %v254_v11  ;;  %327 = vrot.lane.b32.xlu1 %v1083_v14, %s1007_s30 }
  0x17   : > { %311 = vrot.lane.b32.xlu0 %v304_v13, %s1008_s7  ;;  %313 = vrot.lane.b32.xlu1 %v308_v17, %s1008_s7 }
  0x1b   : > { %261 = vrot.lane.b32.xlu0 %v258_v16, %s1006_s29  ;;  %339 = vrot.lane.b32.xlu1 %v308_v17, %s1009_s8 }
  0x1f   : > { %337 = vrot.lane.b32.xlu0 %v304_v13, %s1009_s8  ;;  %351 = vrot.lane.b32.xlu1 %v1083_v14, %s1010_s9  ;;  %s251_s8 = scalar_lea.vmem %s1339_s6, %s884_s25 }
  0x23   : > { %349 = vrot.lane.b32.xlu0 %v1079_v12, %s1010_s9  ;;  %363 = vrot.lane.b32.xlu1 %v308_v17, %s1011_s10 }
  0x27   : > { %361 = vrot.lane.b32.xlu0 %v304_v13, %s1011_s10 }
  0x81   : > { %v1092_v20 = vpop.permute.xlu1 %325 }
  0x85   : > { %v260_v18 = vpop.permute.xlu0 %259  ;;  %v1104_v24 = vpop.permute.xlu1 %327 }
  0x86   : > { %v1090_v19 = vsel %vm263_vm0, 0.0, %v260_v18  ;;  %v1137_v40 = vsel %vm329_vm2, %v1092_v20, %v1104_v24 }
  0x87   : > { %420 = vrot.lane.b32.xlu0 %v1090_v19, %s1012_s11  ;;  %v375_v21 = vrot.slane %v1090_v19, 4  ;;  %v334_v36 = vmul.f32 %v1092_v20, %v1090_v19 }
  0x89   : > { %v1097_v22 = vpop.permute.xlu0 %311  ;;  %378 = vrot.lane.b32.xlu1 %v375_v21, %s1013_s12  ;;  %v1113_v28 = vpop.permute.xlu1 %313  ;;  %v406_v43 = vrot.slane %v334_v36, 4 }
  0x8a   : > { %v320_v23 = vmul.f32 %v1097_v22, %v1090_v19  ;;  %v1117_v29 = vsel %vm315_vm1, %v1097_v22, %v1113_v28 }
  0x8c   : > { %392 = vrot.lane.b32.xlu0 %v320_v23, %s1014_s13 }
  0x8d   : > { %v262_v25 = vpop.permute.xlu0 %261  ;;  %v1132_v37 = vpop.permute.xlu1 %339 }
  0x8e   : > { %v1108_v26 = vsel %vm263_vm0, %v260_v18, %v262_v25  ;;  %v1111_v27 = vsel %vm263_vm0, %v262_v25, 0.0  ;;  %v289_v25 = vmul.f32 %v1079_v12, %v1090_v19 }
  0x8f   : > { %v322_v30 = vmul.f32 %v1113_v28, %v1111_v27  ;;  %v926_v31 = vpack.i.bf16 %v1111_v27, %v1108_v26  ;;  %v376_v32 = vrot.slane %v1108_v26, 4  ;;  %v321_v33 = vmul.f32 %v1117_v29, %v1108_v26 }
  0x90   : > { %v377_v34 = vrot.slane %v1111_v27, 4  ;;  %v335_v44 = vmul.f32 %v1137_v40, %v1108_v26  ;;  %v336_v45 = vmul.f32 %v1104_v24, %v1111_v27  ;;  %v348_v51 = vmul.f32 %v1132_v37, %v1111_v27 }
  0x91   : > { %927 = vrot.lane.b32.xlu0 %v926_v31, %s1012_s11  ;;  %v1128_v35 = vpop.permute.xlu0 %337  ;;  %v936_v38 = vpack.i.bf16 %v322_v30, %v321_v33  ;;  %v1142_v42 = vpop.permute.xlu1 %351  ;;  %v290_v31 = vmul.f32 %v1083_v14, %v1108_v26 }
  0x92   : > { %v931_v39 = vpack.i.bf16 %v377_v34, %v376_v32  ;;  %v1150_v46 = vsel %vm341_vm3, %v1128_v35, %v1132_v37  ;;  %v360_v48 = vmul.f32 %v1142_v42, %v1111_v27  ;;  %v346_v50 = vmul.f32 %v1128_v35, %v1090_v19 }
  0x93   : > { %937 = vrot.lane.b32.xlu1 %v936_v38, %s1014_s13  ;;  %v347_v52 = vmul.f32 %v1150_v46, %v1108_v26  ;;  %v407_v54 = vrot.slane %v335_v44, 4  ;;  %v408_v55 = vrot.slane %v336_v45, 4  ;;  %v436_v57 = vrot.slane %v348_v51, 4 }
  0x94   : > { %v434_v58 = vrot.slane %v346_v50, 4 }
  0x95   : > { %932 = vrot.lane.b32.xlu0 %v931_v39, %s1013_s12  ;;  %v1140_v41 = vpop.permute.xlu0 %349  ;;  %v435_v56 = vrot.slane %v347_v52, 4  ;;  %v951_v59 = vpack.i.bf16 %v408_v55, %v407_v54  ;;  %v1171_v61 = vpop.permute.xlu1 %363 }
  0x96   : > { %v1154_v47 = vsel %vm353_vm4, %v1140_v41, %v1142_v42  ;;  %v358_v62 = vmul.f32 %v1140_v41, %v1090_v19  ;;  %v372_v5 = vmul.f32 %v1171_v61, %v1111_v27 }
  0x97   : > { %v359_v49 = vmul.f32 %v1154_v47, %v1108_v26  ;;  %409 = vrot.lane.b32.xlu1 %v406_v43, %s1015_s14  ;;  %v956_v63 = vpack.i.bf16 %v436_v57, %v435_v56 }
  0x99   : > { %v941_v53 = vpack.i.bf16 %v360_v48, %v359_v49  ;;  %v1169_v60 = vpop.permute.xlu0 %361 }
  0x9a   : > { %v1179_v0 = vsel %vm365_vm5, %v1169_v60, %v1171_v61  ;;  %v370_v4 = vmul.f32 %v1169_v60, %v1090_v19 }
  0x9b   : > { %947 = vrot.lane.b32.xlu1 %v931_v39, %s1016_s15  ;;  %942 = vrot.lane.b32.xlu0 %v941_v53, %s1017_s16  ;;  %v371_v3 = vmul.f32 %v1179_v0, %v1108_v26 }
  0x9f   : > { %437 = vrot.lane.b32.xlu1 %v434_v58, %s1018_s17  ;;  %952 = vrot.lane.b32.xlu0 %v951_v59, %s1015_s14 }
  0xa3   : > { %957 = vrot.lane.b32.xlu1 %v956_v63, %s1018_s17  ;;  %451 = vrot.lane.b32.xlu0 %v358_v62, %s1017_s16 }
  0xa7   : > { %462 = vrot.lane.b32.xlu1 %v375_v21, %s1016_s15  ;;  %478 = vrot.lane.b32.xlu0 %v371_v3, %s1021_s18 }
  0xab   : > { %480 = vrot.lane.b32.xlu1 %v372_v5, %s1021_s18  ;;  %476 = vrot.lane.b32.xlu0 %v370_v4, %s1021_s18 }
  0xaf   : > { %496 = vperm.xlu1 %961, %v256_v7  }
  0xf9   : > { %v421_v8 = vpop.permute.xlu0 %420 }
  0xfb   : > { %v379_v10 = vpop.permute.xlu1 %378 }
  0xfe   : > { %v393_v9 = vpop.permute.xlu0 %392 }
 0x103   : > { %v928_v11 = vpop.permute.xlu0 %927 }
 0x104   : > { %v930_v48 = vunpack.i.h.bf16 %v928_v11  ;;  %v929_v49 = vunpack.i.l.bf16 %v928_v11 }
 0x105   : > { %v938_v13 = vpop.permute.xlu1 %937 }
 0x106   : > { %v940_v27 = vunpack.i.h.bf16 %v938_v13  ;;  %v939_v30 = vunpack.i.l.bf16 %v938_v13  ;;  %v428_v4 = vsel %vm426_vm6, %v929_v49, %v930_v48 }
 0x107   : > { %v933_v15 = vpop.permute.xlu0 %932 }
 0x108   : > { %v935_v17 = vunpack.i.h.bf16 %v933_v15  ;;  %v934_v18 = vunpack.i.l.bf16 %v933_v15  ;;  %v400_v50 = vsel %vm398_vm8, %v939_v30, %v940_v27  ;;  %v399_v52 = vsel %vm398_vm8, %v393_v9, %v939_v30 }
 0x109   : > { %v410_v16 = vpop.permute.xlu1 %409  ;;  %v427_v15 = vsel %vm426_vm6, %v421_v8, %v929_v49  ;;  %v255_v8 = vld [vmem:[%s1334_s1] sm:$0xf] }
 0x10a   : > { %v386_v38 = vsel %vm384_vm7, %v934_v18, %v935_v17  ;;  %v385_v39 = vsel %vm384_vm7, %v379_v10, %v934_v18 }
 0x10b   : > { %v487_v51 = vsel %vm485_vm9, %v290_v31, %v386_v38  ;;  %v486_v57 = vsel %vm485_vm9, %v289_v25, %v385_v39 }
 0x10d   : > { %v948_v21 = vpop.permute.xlu1 %947  ;;  %v943_v23 = vpop.permute.xlu0 %942 }
 0x10e   : > { %v945_v32 = vunpack.i.h.bf16 %v943_v23  ;;  %v944_v33 = vunpack.i.l.bf16 %v943_v23  ;;  %v950_v43 = vunpack.i.h.bf16 %v948_v21  ;;  %v949_v19 = vunpack.i.l.bf16 %v948_v21 }
 0x110   : > { %v459_v59 = vsel %vm457_vm11, %v944_v33, %v945_v32  ;;  %v470_v2 = vsel %vm468_vm13, %v949_v19, %v950_v43 }
 0x111   : > { %v438_v34 = vpop.permute.xlu1 %437  ;;  %v953_v36 = vpop.permute.xlu0 %952  ;;  %v493_v13 = vsel %vm485_vm9, %v459_v59, %v470_v2 }
 0x112   : > { %v955_v44 = vunpack.i.h.bf16 %v953_v36  ;;  %v954_v45 = vunpack.i.l.bf16 %v953_v36 }
 0x114   : > { %v417_v26 = vsel %vm415_vm12, %v954_v45, %v955_v44  ;;  %v416_v53 = vsel %vm415_vm12, %v410_v16, %v954_v45 }
 0x115   : > { %v958_v54 = vpop.permute.xlu1 %957  ;;  %v452_v55 = vpop.permute.xlu0 %451  ;;  %v489_v56 = vsel %vm485_vm9, %v400_v50, %v417_v26  ;;  %v488_v58 = vsel %vm485_vm9, %v399_v52, %v416_v53 }
 0x116   : > { %v960_v62 = vunpack.i.h.bf16 %v958_v54  ;;  %v959_v63 = vunpack.i.l.bf16 %v958_v54  ;;  %v886_v1 = vpack.c.bf16 %v489_v56, %v487_v51  ;;  %v888_v3 = vpack.c.bf16 %v488_v58, %v486_v57 }
 0x117   : > { %v458_v16 = vsel %vm457_vm11, %v452_v55, %v944_v33 }
 0x118   : > { %v444_v5 = vsel %vm443_vm10, %v438_v34, %v959_v63  ;;  %v445_v7 = vsel %vm443_vm10, %v959_v63, %v960_v62  ;;  %887 = vmatprep.subr.bf16.mxu0 %v886_v1 }
 0x119   : > { %v463_v9 = vpop.permute.xlu1 %462  ;;  %v479_v10 = vpop.permute.xlu0 %478  ;;  %889 = vmatpush1.bf16.msra.mxu0 %v888_v3  ;;  %v491_v11 = vsel %vm485_vm9, %v428_v4, %v445_v7  ;;  %v490_v23 = vsel %vm485_vm9, %v427_v15, %v444_v5 }
 0x11a   : > { %v469_v17 = vsel %vm468_vm13, %v463_v9, %v949_v19  ;;  %v890_v18 = vpack.c.bf16 %v493_v13, %v491_v11 }
 0x11b   : > { %v492_v21 = vsel %vm485_vm9, %v458_v16, %v469_v17 }
 0x11c   : > { %891 = vmatprep.subr.bf16.mxu0 %v890_v18  ;;  %v892_v25 = vpack.c.bf16 %v492_v21, %v490_v23 }
 0x11d   : > { %v481_v27 = vpop.permute.xlu1 %480  ;;  %v477_v31 = vpop.permute.xlu0 %476 }
 0x11e   : > { %v484_v30 = vsel %vm482_vm14, %v479_v10, %v481_v27  ;;  %893 = vmatpush1.bf16.msra.mxu0 %v892_v25  ;;  %v483_v32 = vsel %vm482_vm14, %v477_v31, %v479_v10 }
 0x11f   : > { %876 = vmatprep.subr.msk.mxu0 %vm485_vm9, %v484_v30 }
 0x122   : > { %877 = vmatpush1.msk.msra.mxu0 %vm485_vm9, %v483_v32 }
 0x123   : > { %878 = vmatmul.mubr.msk.f32.vlgmr.msra.gmra.mrb[0].mxu0 %vm499_vm15, %v255_v8 }
 0x12e   : > { %v497_v33 = vpop.permute.xlu1 %496 }
 0x1f6   : > { %v573_v34 = vpop.f32.mrb[0].mxu0 }
 0x1f7   : > { %v574_v36 = vadd.f32 %v573_v34, %v497_v33  ;;  %v575_v38 = vpop.f32.mrb[1].mxu0 }
 0x1f8   : > { %v576_v39 = vadd.f32 %v575_v38, %v497_v33 }
 0x1f9   : > { %v578_v43 = vmax.f32 %v574_v36, 0.0 }
 0x1fa   : > { %v579_v19 = vmax.f32 %v576_v39, 0.0 }
 0x1fb   : > { %584 = vrot.lane.b32.xlu0 %v578_v43, %s1006_s29 }
 0x1fc   : > { %586 = vrot.lane.b32.xlu1 %v579_v19, %s1006_s29 }
 0x26d   : > { %v585_v44 = vpop.permute.xlu0 %584 }
 0x26e   : > { %v1235_v45 = vsel %vm263_vm0, 0.0, %v585_v44  ;;  %v587_v48 = vpop.permute.xlu1 %586 }
 0x26f   : > { %v1238_v49 = vsel %vm263_vm0, %v585_v44, %v587_v48  ;;  %v593_v50 = vsel %vm263_vm0, %v587_v48, 0.0  ;;  %655 = vrot.lane.b32.xlu0 %v1235_v45, %s1012_s11  ;;  %v613_v26 = vrot.slane %v1235_v45, 4  ;;  %v596_v57 = vmul.f32 %v1235_v45, %v1097_v22 }
 0x270   : > { %v962_v51 = vpack.i.bf16 %v593_v50, %v1238_v49  ;;  %v597_v52 = vmul.f32 %v1238_v49, %v1117_v29  ;;  %v598_v53 = vmul.f32 %v593_v50, %v1113_v28  ;;  %v614_v55 = vrot.slane %v1238_v49, 4 }
 0x271   : > { %616 = vrot.lane.b32.xlu1 %v613_v26, %s1013_s12  ;;  %v615_v56 = vrot.slane %v593_v50, 4  ;;  %v599_v29 = vmul.f32 %v1235_v45, %v1092_v20  ;;  %v606_v28 = vmul.f32 %v1238_v49, %v1154_v47  ;;  %v607_v59 = vmul.f32 %v593_v50, %v1142_v42 }
 0x272   : > { %v972_v54 = vpack.i.bf16 %v598_v53, %v597_v52  ;;  %v600_v62 = vmul.f32 %v1238_v49, %v1137_v40  ;;  %v601_v63 = vmul.f32 %v593_v50, %v1104_v24  ;;  %v602_v1 = vmul.f32 %v1235_v45, %v1128_v35 }
 0x273   : > { %963 = vrot.lane.b32.xlu0 %v962_v51, %s1012_s11  ;;  %v982_v58 = vpack.i.bf16 %v615_v56, %v614_v55  ;;  %v642_v22 = vrot.slane %v599_v29, 4  ;;  %v603_v20 = vmul.f32 %v1238_v49, %v1150_v46  ;;  %v604_v47 = vmul.f32 %v593_v50, %v1132_v37 }
 0x274   : > { %v977_v2 = vpack.i.bf16 %v607_v59, %v606_v28  ;;  %v643_v42 = vrot.slane %v600_v62, 4  ;;  %v644_v3 = vrot.slane %v601_v63, 4  ;;  %v668_v40 = vrot.slane %v602_v1, 4 }
 0x275   : > { %973 = vrot.lane.b32.xlu1 %v972_v54, %s1014_s13  ;;  %v669_v24 = vrot.slane %v603_v20, 4  ;;  %v670_v4 = vrot.slane %v604_v47, 4  ;;  %v605_v37 = vmul.f32 %v1235_v45, %v1140_v41  ;;  %v609_v46 = vmul.f32 %v1238_v49, %v1179_v0  ;;  %v581_v41 = vld [vmem:[%s1337_s4] sm:$0xf] }
 0x276   : > { %v987_v5 = vpack.i.bf16 %v644_v3, %v643_v42  ;;  %v610_v7 = vmul.f32 %v593_v50, %v1171_v61  ;;  %v608_v9 = vmul.f32 %v1235_v45, %v1169_v60  ;;  %v595_v38 = vmul.f32 %v1238_v49, %v1083_v14 }
 0x277   : > { %629 = vrot.lane.b32.xlu0 %v596_v57, %s1014_s13  ;;  %v992_v35 = vpack.i.bf16 %v670_v4, %v669_v24  ;;  %v594_v39 = vmul.f32 %v1235_v45, %v1079_v12 }
 0x279   : > { %983 = vrot.lane.b32.xlu1 %v982_v58, %s1016_s15 }
 0x27b   : > { %968 = vrot.lane.b32.xlu0 %v982_v58, %s1013_s12 }
 0x27d   : > { %645 = vrot.lane.b32.xlu1 %v642_v22, %s1015_s14 }
 0x27f   : > { %978 = vrot.lane.b32.xlu0 %v977_v2, %s1017_s16 }
 0x281   : > { %671 = vrot.lane.b32.xlu1 %v668_v40, %s1018_s17 }
 0x283   : > { %988 = vrot.lane.b32.xlu0 %v987_v5, %s1015_s14 }
 0x285   : > { %993 = vrot.lane.b32.xlu1 %v992_v35, %s1018_s17 }
 0x287   : > { %684 = vrot.lane.b32.xlu0 %v605_v37, %s1017_s16 }
 0x289   : > { %694 = vrot.lane.b32.xlu1 %v613_v26, %s1016_s15 }
 0x28b   : > { %709 = vrot.lane.b32.xlu0 %v609_v46, %s1021_s18 }
 0x28d   : > { %711 = vrot.lane.b32.xlu1 %v610_v7, %s1021_s18  ;;  %v580_v7 = vld [vmem:[%s1336_s3] sm:$0xf] }
 0x28f   : > { %707 = vrot.lane.b32.xlu0 %v608_v9, %s1021_s18 }
 0x291   : > { %725 = vperm.xlu1 %961, %v581_v41  }
 0x2e1   : > { %v656_v10 = vpop.permute.xlu0 %655 }
 0x2e3   : > { %v617_v11 = vpop.permute.xlu1 %616 }
 0x2e5   : > { %v964_v13 = vpop.permute.xlu0 %963 }
 0x2e6   : > { %v966_v21 = vunpack.i.h.bf16 %v964_v13  ;;  %v965_v23 = vunpack.i.l.bf16 %v964_v13 }
 0x2e7   : > { %v974_v0 = vpop.permute.xlu1 %973 }
 0x2e8   : > { %v976_v27 = vunpack.i.h.bf16 %v974_v0  ;;  %v975_v30 = vunpack.i.l.bf16 %v974_v0  ;;  %v662_v43 = vsel %vm426_vm6, %v965_v23, %v966_v21  ;;  %v661_v47 = vsel %vm426_vm6, %v656_v10, %v965_v23 }
 0x2e9   : > { %v630_v15 = vpop.permute.xlu0 %629 }
 0x2ea   : > { %v635_v50 = vsel %vm398_vm8, %v630_v15, %v975_v30  ;;  %v636_v52 = vsel %vm398_vm8, %v975_v30, %v976_v27 }
 0x2eb   : > { %v984_v16 = vpop.permute.xlu1 %983 }
 0x2ec   : > { %v986_v33 = vunpack.i.h.bf16 %v984_v16  ;;  %v985_v34 = vunpack.i.l.bf16 %v984_v16 }
 0x2ed   : > { %v969_v17 = vpop.permute.xlu0 %968 }
 0x2ee   : > { %v971_v25 = vunpack.i.h.bf16 %v969_v17  ;;  %v970_v60 = vunpack.i.l.bf16 %v969_v17  ;;  %v701_v45 = vsel %vm468_vm13, %v985_v34, %v986_v33 }
 0x2ef   : > { %v646_v61 = vpop.permute.xlu1 %645 }
 0x2f0   : > { %v623_v48 = vsel %vm384_vm7, %v970_v60, %v971_v25  ;;  %v622_v53 = vsel %vm384_vm7, %v617_v11, %v970_v60 }
 0x2f1   : > { %v979_v18 = vpop.permute.xlu0 %978  ;;  %v716_v56 = vsel %vm485_vm9, %v595_v38, %v623_v48  ;;  %v715_v62 = vsel %vm485_vm9, %v594_v39, %v622_v53 }
 0x2f2   : > { %v981_v31 = vunpack.i.h.bf16 %v979_v18  ;;  %v980_v8 = vunpack.i.l.bf16 %v979_v18 }
 0x2f3   : > { %v672_v32 = vpop.permute.xlu1 %671 }
 0x2f4   : > { %v691_v26 = vsel %vm457_vm11, %v980_v8, %v981_v31 }
 0x2f5   : > { %v989_v36 = vpop.permute.xlu0 %988  ;;  %v722_v20 = vsel %vm485_vm9, %v691_v26, %v701_v45 }
 0x2f6   : > { %v991_v19 = vunpack.i.h.bf16 %v989_v36  ;;  %v990_v44 = vunpack.i.l.bf16 %v989_v36 }
 0x2f7   : > { %v994_v51 = vpop.permute.xlu1 %993 }
 0x2f8   : > { %v996_v54 = vunpack.i.h.bf16 %v994_v51  ;;  %v995_v14 = vunpack.i.l.bf16 %v994_v51  ;;  %v652_v49 = vsel %vm415_vm12, %v990_v44, %v991_v19  ;;  %v651_v12 = vsel %vm415_vm12, %v646_v61, %v990_v44 }
 0x2f9   : > { %v685_v55 = vpop.permute.xlu0 %684  ;;  %v718_v57 = vsel %vm485_vm9, %v636_v52, %v652_v49  ;;  %v717_v58 = vsel %vm485_vm9, %v635_v50, %v651_v12 }
 0x2fa   : > { %v677_v29 = vsel %vm443_vm10, %v672_v32, %v995_v14  ;;  %v678_v28 = vsel %vm443_vm10, %v995_v14, %v996_v54  ;;  %v894_v59 = vpack.c.bf16 %v718_v57, %v716_v56  ;;  %v896_v22 = vpack.c.bf16 %v717_v58, %v715_v62 }
 0x2fb   : > { %v695_v63 = vpop.permute.xlu1 %694  ;;  %v720_v1 = vsel %vm485_vm9, %v662_v43, %v678_v28  ;;  %v690_v2 = vsel %vm457_vm11, %v685_v55, %v980_v8  ;;  %v719_v4 = vsel %vm485_vm9, %v661_v47, %v677_v29 }
 0x2fc   : > { %v700_v42 = vsel %vm468_vm13, %v695_v63, %v985_v34  ;;  %895 = vmatprep.subr.bf16.mxu1 %v894_v59  ;;  %v898_v3 = vpack.c.bf16 %v722_v20, %v720_v1 }
 0x2fd   : > { %v721_v40 = vsel %vm485_vm9, %v690_v2, %v700_v42  ;;  %v710_v24 = vpop.permute.xlu0 %709  ;;  %897 = vmatpush1.bf16.msra.mxu1 %v896_v22 }
 0x2fe   : > { %899 = vmatprep.subr.bf16.mxu1 %v898_v3  ;;  %v900_v5 = vpack.c.bf16 %v721_v40, %v719_v4 }
 0x2ff   : > { %v712_v35 = vpop.permute.xlu1 %711 }
 0x300   : > { %v714_v37 = vsel %vm482_vm14, %v710_v24, %v712_v35 }
 0x301   : > { %v708_v46 = vpop.permute.xlu0 %707  ;;  %901 = vmatpush1.bf16.msra.mxu1 %v900_v5 }
 0x302   : > { %879 = vmatprep.subr.msk.mxu1 %vm485_vm9, %v714_v37  ;;  %v713_v9 = vsel %vm482_vm14, %v708_v46, %v710_v24 }
 0x305   : > { %880 = vmatpush1.msk.msra.mxu1 %vm485_vm9, %v713_v9 }
 0x306   : > { %881 = vmatmul.mubr.msk.f32.vlgmr.msra.gmra.mrb[0].mxu1 %vm499_vm15, %v580_v7 }
 0x310   : > { %v726_v41 = vpop.permute.xlu1 %725 }
 0x3d9   : > { %v801_v10 = vpop.f32.mrb[0].mxu1 }
 0x3da   : > { %v802_v11 = vadd.f32 %v801_v10, %v726_v41  ;;  %v803_v13 = vpop.f32.mrb[1].mxu1 }
 0x3db   : > { %v804_v0 = vadd.f32 %v803_v13, %v726_v41 }
 0x3dd   : > { %v808_v15 = vcombine.low %v802_v11, %v804_v0 }
 0x3df   : > { %v810_v16 = vadd.f32 %v808_v15, %v1076_v6 }
 0x3e1   : > { %811 = vst [vmem:[%s251_s8] sm:$0xff] %v810_v16 }
 0x3e2 PF: > { %s16_s21 = sadd.s32 1, %s1004_s21  }
 0x3e3   : > { %p13_p4 = scmp.ge.s32.totalorder %s16_s21, 4  }
 0x3e5   :  { %15 = sbr.rel (!%p13_p4) target bundleno = 1 (0x1), region = 74 }

</bundles_post_ra>
